<compile_context>
chip_gen: v5e
topology: v5e:2x2
jax: 0.10.0
libtpu: 0.0.40
codegen_flags: <defaults>
</compile_context>

<pallas_src>
import jax
import jax.numpy as jnp
from jax.experimental import pallas as pl
from jax.experimental.pallas import tpu as pltpu


def _transition_kernel(x_ref, scale_ref, shift_ref, w_ref, o_ref):
    """Fused BN(eval)+ReLU -> 2x2 avg pool -> 1x1 conv for one tile of output rows.

    x_ref:     [tr, 2, Wo, 2*C]  two input image rows per output row; the horizontal pool
                                 pair is packed next to the channels in the lane dim (2*C).
    scale_ref: [1, 2*C]          folded BN scale (gamma / sqrt(var+eps)), tiled twice.
    shift_ref: [1, 2*C]          folded BN shift (beta - mean*scale), tiled twice.
    w_ref:     [2*C, Fp]         1x1 conv weight duplicated ([w; w]) and zero-padded to a
                                 lane-dense Fp (multiple of 128).
    o_ref:     [tr*Wo, Fp]       pooled conv output (output pixels x padded out-channels).
    """
    x = x_ref[...]                                              # (tr, 2, Wo, 2C)
    a = jnp.maximum(x * scale_ref[...] + shift_ref[...], 0.0)   # BN + ReLU (lane broadcast)
    s = a[:, 0] + a[:, 1]                                       # vertical pool pair -> (tr, Wo, 2C)
    tr, wo, k2 = s.shape
    s2 = s.reshape(tr * wo, k2).astype(w_ref.dtype)             # (P_tile, 2C); horiz. pair lives in K
    y = jnp.dot(s2, w_ref[...], preferred_element_type=jnp.float32)   # single MXU matmul
    o_ref[...] = (0.25 * y).astype(o_ref.dtype)                 # 2x2 average


def _pick_row_tile(rows, wo, c, fp, vmem_budget_bytes=6 * 1024 * 1024, target_pixels=512):
    """Output rows per grid step: a divisor of `rows`, VMEM-friendly, with the output tile
    sublane-aligned ((tile*Wo) % 8 == 0 or full), and >= 2 grid steps when possible."""
    bytes_per_row = (2 * wo * 2 * c + wo * fp) * 4          # f32 input rows + output tile rows
    cap = max(1, min(rows,
                     max(1, target_pixels // max(1, wo)),
                     max(1, vmem_budget_bytes // max(1, bytes_per_row))))
    if rows >= 2:
        cap = min(cap, (rows + 1) // 2)                     # give the megacore >= 2 tiles
    divisors = [d for d in range(1, rows + 1) if rows % d == 0]
    ok = [d for d in divisors if (d * wo) % 8 == 0 or d == rows]
    cand = [d for d in ok if d <= cap]
    return max(cand) if cand else min(ok)


def transition_layer(x_nchw, gamma, beta, running_mean, running_var, conv_w,
                     eps=1e-5, mxu_dtype=jnp.float32, row_tile=None):
    """DenseNet TransitionLayer forward (eval-mode BatchNorm). NCHW in / NCHW out.

    x_nchw: [N, C, H, W] float32.  conv_w: [F, C, 1, 1] (PyTorch Conv2d weight layout).
    """
    N, C, H, W = x_nchw.shape
    F = conv_w.shape[0]
    assert H % 2 == 0 and W % 2 == 0, "AvgPool2d(2,2) needs even spatial dims"
    Ho, Wo = H // 2, W // 2

    # Fold BatchNorm (inference) into per-channel scale/shift.
    scale = (gamma.astype(jnp.float32) /
             jnp.sqrt(running_var.astype(jnp.float32) + eps))
    shift = beta.astype(jnp.float32) - running_mean.astype(jnp.float32) * scale

    # 1x1 conv weight [F, C, 1, 1] -> [C, F]; duplicate along C so the horizontal pool pair is
    # folded into the contraction (K = 2*C); zero-pad F to a lane-dense multiple of 128.
    w_mat = conv_w[:, :, 0, 0].T.astype(jnp.float32)            # (C, F)
    Fp = ((F + 127) // 128) * 128
    w2 = jnp.concatenate([w_mat, w_mat], axis=0)                # (2C, F)
    w2 = jnp.pad(w2, ((0, 0), (0, Fp - F))).astype(mxu_dtype)   # (2C, Fp)
    scale2 = jnp.concatenate([scale, scale])[None, :]           # (1, 2C)
    shift2 = jnp.concatenate([shift, shift])[None, :]           # (1, 2C)

    # Single NCHW->NHWC transpose, then a FREE view (no extra HBM traffic):
    #   (N, H, W, C) -> (N*Ho, 2, Wo, 2*C)
    # axis 0 = output rows across the batch, axis 1 = vertical pool pair,
    # lane dim packs the horizontal pool pair next to the channels.
    R = N * Ho
    x_view = jnp.transpose(x_nchw, (0, 2, 3, 1)).reshape(R, 2, Wo, 2 * C)

    tr = row_tile if row_tile is not None else _pick_row_tile(R, Wo, C, Fp)
    assert R % tr == 0, (R, tr)
    grid = (R // tr,)

    out = pl.pallas_call(
        _transition_kernel,
        out_shape=jax.ShapeDtypeStruct((R * Wo, Fp), x_nchw.dtype),
        grid=grid,
        in_specs=[
            pl.BlockSpec((tr, 2, Wo, 2 * C), lambda g: (g, 0, 0, 0)),
            pl.BlockSpec((1, 2 * C), lambda g: (0, 0)),   # constant index map -> stays resident
            pl.BlockSpec((1, 2 * C), lambda g: (0, 0)),
            pl.BlockSpec((2 * C, Fp), lambda g: (0, 0)),
        ],
        out_specs=pl.BlockSpec((tr * Wo, Fp), lambda g: (g, 0)),
        compiler_params=pltpu.CompilerParams(dimension_semantics=("parallel",)),
    )(x_view, scale2, shift2, w2)

    # (N*Ho*Wo, Fp) -> strip lane padding -> NCHW (output is 1/8 the input size; cheap).
    return out[:, :F].reshape(N, Ho, Wo, F).transpose(0, 3, 1, 2)


def _reference(x_nchw, gamma, beta, running_mean, running_var, conv_w, eps=1e-5):
    scale = gamma / jnp.sqrt(running_var + eps)
    shift = beta - running_mean * scale
    a = jnp.maximum(x_nchw * scale[None, :, None, None] + shift[None, :, None, None], 0.0)
    c = jnp.einsum("nchw,fc->nfhw", a, conv_w[:, :, 0, 0])
    N, F, H, W = c.shape
    return c.reshape(N, F, H // 2, 2, W // 2, 2).mean(axis=(3, 5))


if __name__ == "__main__":
    num_features = 4
    reduction = 0.5
    out_features = int(num_features * reduction)   # 2
    N, H, W = 2, 16, 16

    key = jax.random.PRNGKey(0)
    kx, kw = jax.random.split(key)

    x = jax.random.normal(kx, (N, num_features, H, W), dtype=jnp.float32)

    # Deterministic synthetic parameters (no checkpoint loading).
    gamma = 1.0 + 0.1 * jnp.arange(num_features, dtype=jnp.float32)
    beta = 0.01 * jnp.arange(num_features, dtype=jnp.float32)
    running_mean = 0.05 * jnp.arange(num_features, dtype=jnp.float32)
    running_var = 1.0 + 0.02 * jnp.arange(num_features, dtype=jnp.float32)
    conv_w = 0.1 * jax.random.normal(
        kw, (out_features, num_features, 1, 1), dtype=jnp.float32
    )

    y = transition_layer(x, gamma, beta, running_mean, running_var, conv_w)
    y = jax.block_until_ready(y)

    y_ref = _reference(x, gamma, beta, running_mean, running_var, conv_w)
    assert y.shape == (N, out_features, H // 2, W // 2), y.shape
    assert jnp.allclose(y, y_ref, atol=1e-5, rtol=1e-5), "mismatch vs reference"

    print("KERNEL_OK")
</pallas_src>

<mosaic_0001>
module attributes {stable_mosaic.version = 11 : i64} {
  func.func @_transition_kernel(%arg0: i32, %arg1: memref<8x2x8x8xf32, #tpu.memory_space<vmem>>, %arg2: memref<1x8xf32, #tpu.memory_space<vmem>>, %arg3: memref<1x8xf32, #tpu.memory_space<vmem>>, %arg4: memref<8x128xf32, #tpu.memory_space<vmem>>, %arg5: memref<64x128xf32, #tpu.memory_space<vmem>>) attributes {dimension_semantics = [#tpu.dimension_semantics<parallel>], iteration_bounds = array<i64: 2>, scalar_prefetch = 0 : i64, scratch_operands = 0 : i64, tpu.core_type = #tpu.core_type<tc>, window_params = [{transform_indices = @transform_0, window_bounds = array<i64: 8, 2, 8, 8>}, {pipeline_mode = #tpu.pipeline_mode<synchronous>, transform_indices = @transform_1, window_bounds = array<i64: 1, 8>}, {pipeline_mode = #tpu.pipeline_mode<synchronous>, transform_indices = @transform_2, window_bounds = array<i64: 1, 8>}, {pipeline_mode = #tpu.pipeline_mode<synchronous>, transform_indices = @transform_3, window_bounds = array<i64: 8, 128>}, {transform_indices = @transform_4, window_bounds = array<i64: 64, 128>}]} {
    %c0 = arith.constant 0 : index
    %c0_0 = arith.constant 0 : index
    %c0_1 = arith.constant 0 : index
    %c0_2 = arith.constant 0 : index
    %0 = vector.load %arg1[%c0, %c0_0, %c0_1, %c0_2] : memref<8x2x8x8xf32, #tpu.memory_space<vmem>>, vector<8x2x8x8xf32>
    %c0_3 = arith.constant 0 : index
    %c0_4 = arith.constant 0 : index
    %1 = vector.load %arg2[%c0_3, %c0_4] : memref<1x8xf32, #tpu.memory_space<vmem>>, vector<1x8xf32>
    %2 = vector.shape_cast %1 : vector<1x8xf32> to vector<1x1x1x8xf32>
    %3 = vector.broadcast %2 : vector<1x1x1x8xf32> to vector<8x2x8x8xf32>
    %4 = arith.mulf %0, %3 : vector<8x2x8x8xf32>
    %c0_5 = arith.constant 0 : index
    %c0_6 = arith.constant 0 : index
    %5 = vector.load %arg3[%c0_5, %c0_6] : memref<1x8xf32, #tpu.memory_space<vmem>>, vector<1x8xf32>
    %6 = vector.shape_cast %5 : vector<1x8xf32> to vector<1x1x1x8xf32>
    %7 = vector.broadcast %6 : vector<1x1x1x8xf32> to vector<8x2x8x8xf32>
    %8 = arith.addf %4, %7 : vector<8x2x8x8xf32>
    %cst = arith.constant 0.000000e+00 : f32
    %9 = vector.broadcast %cst : f32 to vector<8x2x8x8xf32>
    %10 = arith.maximumf %8, %9 : vector<8x2x8x8xf32>
    %11 = vector.extract_strided_slice %10 {offsets = [0, 0, 0, 0], sizes = [8, 1, 8, 8], strides = [1, 1, 1, 1]} : vector<8x2x8x8xf32> to vector<8x1x8x8xf32>
    %12 = vector.shape_cast %11 : vector<8x1x8x8xf32> to vector<8x8x8xf32>
    %13 = vector.extract_strided_slice %10 {offsets = [0, 1, 0, 0], sizes = [8, 1, 8, 8], strides = [1, 1, 1, 1]} : vector<8x2x8x8xf32> to vector<8x1x8x8xf32>
    %14 = vector.shape_cast %13 : vector<8x1x8x8xf32> to vector<8x8x8xf32>
    %15 = arith.addf %12, %14 : vector<8x8x8xf32>
    %16 = vector.shape_cast %15 : vector<8x8x8xf32> to vector<64x8xf32>
    %c0_7 = arith.constant 0 : index
    %c0_8 = arith.constant 0 : index
    %17 = vector.load %arg4[%c0_7, %c0_8] : memref<8x128xf32, #tpu.memory_space<vmem>>, vector<8x128xf32>
    %cst_9 = arith.constant dense<0.000000e+00> : vector<64x128xf32>
    %18 = tpu.matmul %16, %17, %cst_9 {dimension_numbers = #tpu.dot_dimension_numbers<[1], [0], [0], [1], [0, 0, 1, 1], [], []>} : vector<64x8xf32>, vector<8x128xf32>, vector<64x128xf32> -> vector<64x128xf32>
    %cst_10 = arith.constant 2.500000e-01 : f32
    %19 = vector.broadcast %cst_10 : f32 to vector<64x128xf32>
    %20 = arith.mulf %19, %18 : vector<64x128xf32>
    %c0_11 = arith.constant 0 : index
    %c0_12 = arith.constant 0 : index
    %21 = vector.load %arg5[%c0_11, %c0_12] : memref<64x128xf32, #tpu.memory_space<vmem>>, vector<64x128xf32>
    tpu.vector_store %arg5[%c0_11, %c0_12], %20 {strides = array<i32>} : memref<64x128xf32, #tpu.memory_space<vmem>>, vector<64x128xf32>,
    return
  }
  func.func @transform_0(%arg0: i32) -> (i32, i32, i32, i32) {
    %c0_i32 = arith.constant 0 : i32
    %c0_i32_0 = arith.constant 0 : i32
    %c0_i32_1 = arith.constant 0 : i32
    %c0_i32_2 = arith.constant 0 : i32
    return %arg0, %c0_i32, %c0_i32_0, %c0_i32_1 : i32, i32, i32, i32
  }
  func.func @transform_1(%arg0: i32) -> (i32, i32) {
    %c0_i32 = arith.constant 0 : i32
    %c0_i32_0 = arith.constant 0 : i32
    %c0_i32_1 = arith.constant 0 : i32
    return %c0_i32, %c0_i32_0 : i32, i32
  }
  func.func @transform_2(%arg0: i32) -> (i32, i32) {
    %c0_i32 = arith.constant 0 : i32
    %c0_i32_0 = arith.constant 0 : i32
    %c0_i32_1 = arith.constant 0 : i32
    return %c0_i32, %c0_i32_0 : i32, i32
  }
  func.func @transform_3(%arg0: i32) -> (i32, i32) {
    %c0_i32 = arith.constant 0 : i32
    %c0_i32_0 = arith.constant 0 : i32
    %c0_i32_1 = arith.constant 0 : i32
    return %c0_i32, %c0_i32_0 : i32, i32
  }
  func.func @transform_4(%arg0: i32) -> (i32, i32) {
    %c0_i32 = arith.constant 0 : i32
    %c0_i32_0 = arith.constant 0 : i32
    return %arg0, %c0_i32 : i32, i32
  }
}

</mosaic_0001>

<bundles_post_ra>
// kernel: tpu_custom_call.1
= control target key start
LH: loop header
LB: loop body
LE: loop exit
PB: predicated region body
PF: predicated region fallthrough
CT: control target
= control target key end

     0   :  { %9 = vsyncpa [#allocation3], 0  ;;  %s762_s0 = inlined_call_operand.vmem [shape: f32[16,2,8,8], index: 0, kind: input, shape index: {}]   ;;  %s763_s1 = inlined_call_operand.vmem [shape: f32[1,8], index: 1, kind: input, shape index: {}]   ;;  %s764_s2 = inlined_call_operand.vmem [shape: f32[1,8], index: 2, kind: input, shape index: {}]   ;;  %s765_s3 = inlined_call_operand.vmem [shape: f32[8,128], index: 3, kind: input, shape index: {}]   ;;  %s766_s4 = inlined_call_operand.hbm [shape: f32[128,128], index: 4, kind: output, shape index: {}]  }
   0x1   :  { %11 = vsyncpa [#allocation3 + $0x1], 0  ;;  %s603_s15 = smov 0   ;;  %s605_s16 = smov 0  }
   0x2   :  { %s607_s17 = smov 0   ;;  %s609_s18 = smov 0  }
   0x3 LB: > { %s624_s19 = sadd.s32 4294967295, %s574_s18   ;;  %s443_s20 = sadd.s32 4294967294, %s574_s18   ;;  %s574_s18 = sphi %s609_s18, %s772_s18   ;;  %s570_s17 = sphi %s607_s17, %s771_s17   ;;  %s566_s16 = sphi %s605_s16, %s770_s16   ;;  %s562_s15 = sphi %s603_s15, %s769_s15  }
   0x4   : > { %s628_s21 = sadd.s32 1, %s574_s18   ;;  %s113_s22 = sadd.s32 1, %s570_s17 }
   0x5   : > { %s110_s23 = ssub.s32 %s574_s18, %s628_s21  ;;  %p123_p0 = scmp.ne.s32.totalorder %s570_s17, %s566_s16 }
   0x6   : > { %p111_p1 = scmp.eq.s32.totalorder %s110_s23, 0  ;;  %p124_p2 = scmp.eq.s32.totalorder %s624_s19, 1 }
   0x7   : > { %p129_p3 = scmp.ne.s32.totalorder %s566_s16, %s562_s15  ;;  %p130_p4 = scmp.eq.s32.totalorder %s443_s20, 1 }
   0x8   : > { %s639_s24 = scalar_select %p111_p1, %s570_s17, %s113_s22  }
   0x9   : > { %p641_p5 = por %p124_p2, %p123_p0  ;;  %p645_p6 = por %p130_p4, %p129_p3 }
   0xa   : > { %p446_p7 = scmp.ge.s32.totalorder %s574_s18, 1  ;;  %p167_p8 = scmp.lt.s32.totalorder %s574_s18, 3 }
   0xc   : > { %p168_p9 = pnand %p446_p7, %p167_p8 }
   0xd   : > { %s448_s29 = sshll.u32 (!%p168_p9), %s624_s19, 3  ;;  %s191_s12 = sand.u32 (!%p168_p9), 1, %s566_s16  }
   0xe   : > { %171 = sbr.rel (%p168_p9) target bundleno = 178 (0xb2), region = 36  ;;  %p195_p10 = scmp.lt.s32.totalorder (!%p168_p9), %s448_s29, 15 }
   0xf   : > { %s447_s13 = sshll.u32 (!%p168_p9), %s191_s12, 6  ;;  %s465_s20 = sshll.u32 (!%p168_p9), %s624_s19, 6 }
  0x10   : > { %s193_s14 = scalar_lea.vmem (!%p168_p9), [#allocation2], %s447_s13  ;;  %s377_s27 = scalar_lea.hbm (!%p168_p9), %s766_s4, %s465_s20 }
  0x11   : > { %s378_s28 = sshll.u32 (!%p168_p9), %s193_s14, 4  ;;  %s366_s19 = scalar_lea.sflag (!%p168_p9), [#allocation3], %s191_s12  ;;  %s379_s28 = int_to_ptr.vmem [resolvable:$true] %s378_s28 }
  0x12   : > { %s532_s8 = scalar_lea.hbm (!%p168_p9), %s766_s4, 128 }
  0x13   : > { %v282_v0 = vld [vmem:[%s765_s3] sm:$0xff]  ;;  %s774_s29 = smov (!%p195_p10, %s448_s29), 15  ;;  %vm283_vm0 = vcmask 64512  }
  0x14   : > { %467 = vmatpush.msra.mxu2 %v282_v0  ;;  %468 = vmatpush.msra.mxu3 %v282_v0  ;;  %v658_v1 = vld [vmem:[%s763_s1] ss:$0 sm:$0xff]  ;;  %s464_s6 = sshll.u32 %s774_s29, 4  ;;  %s380_s29 = sshll.u32 %s377_s27, 4  ;;  %s381_s29 = int_to_ptr.hbm [resolvable:$true] %s380_s29 }
  0x15   : > { %323 = vmatpush.msra.mxu0 %v282_v0  ;;  %466 = vmatpush.msra.mxu1 %v282_v0  ;;  %s663_s9 = scalar_lea.vmem %s762_s0, %s464_s6  ;;  %v668_v2 = vld [vmem:[%s764_s2] ss:$0 sm:$0xff]  ;;  %s526_s30 = sshra.s32 %s381_s29, 4  ;;  %s527_s30 = int_to_ptr.hbm [resolvable:$true] %s526_s30 }
  0x16   : > { %v210_v3 = vld [vmem:[%s663_s9 + $0x40] sm:$0xff]  ;;  %v211_v4 = vld [vmem:[%s663_s9 + $0x48] sm:$0xff]  ;;  %v212_v25 = vld [vmem:[%s663_s9 + $0x50] sm:$0xff]  ;;  %s528_s5 = scalar_lea.hbm %s527_s30, 64  ;;  %p533_p0 = scmp.lt.s32.totalorder %s527_s30, %s766_s4 }
  0x17   : > { %v214_v5 = vld [vmem:[%s663_s9 + $0x60] sm:$0xff]  ;;  %v230_v6 = vmul.f32 %v658_v1, %v210_v3  ;;  %v231_v7 = vmul.f32 %v658_v1, %v211_v4  ;;  %v215_v8 = vld [vmem:[%s663_s9 + $0x68] sm:$0xff]  ;;  %v213_v26 = vld [vmem:[%s663_s9 + $0x58] sm:$0xff]  ;;  %v232_v40 = vmul.f32 %v658_v1, %v212_v25  ;;  %p529_p11 = scmp.ne.s32.totalorder %s527_s30, %s528_s5  ;;  %p534_p1 = scmp.lt.s32.totalorder %s532_s8, %s528_s5 }
  0x18   : > { %v234_v9 = vmul.f32 %v658_v1, %v214_v5  ;;  %v202_v10 = vld [vmem:[%s663_s9] sm:$0xff]  ;;  %v203_v11 = vld [vmem:[%s663_s9 + $0x8] sm:$0xff]  ;;  %v235_v12 = vmul.f32 %v658_v1, %v215_v8  ;;  %v216_v31 = vld [vmem:[%s663_s9 + $0x70] sm:$0xff]  ;;  %v233_v41 = vmul.f32 %v658_v1, %v213_v26 }
  0x19   : > { %v222_v13 = vmul.f32 %v658_v1, %v202_v10  ;;  %v223_v14 = vmul.f32 %v658_v1, %v203_v11  ;;  %v206_v15 = vld [vmem:[%s663_s9 + $0x20] sm:$0xff]  ;;  %v207_v16 = vld [vmem:[%s663_s9 + $0x28] sm:$0xff]  ;;  %v250_v17 = vadd.f32 %v668_v2, %v230_v6  ;;  %v251_v18 = vadd.f32 %v668_v2, %v231_v7  ;;  %v217_v36 = vld [vmem:[%s663_s9 + $0x78] sm:$0xff]  ;;  %p530_p12 = pnand %p529_p11, %p641_p5  ;;  %p535_p2 = por %p534_p1, %p533_p0 }
  0x1a   : > { %v254_v19 = vadd.f32 %v668_v2, %v234_v9  ;;  %v226_v20 = vmul.f32 %v658_v1, %v206_v15  ;;  %v255_v21 = vadd.f32 %v668_v2, %v235_v12  ;;  %v227_v24 = vmul.f32 %v658_v1, %v207_v16  ;;  %v204_v37 = vld [vmem:[%s663_s9 + $0x10] sm:$0xff]  ;;  %v205_v42 = vld [vmem:[%s663_s9 + $0x18] sm:$0xff] }
  0x1b   : > { %v242_v22 = vadd.f32 %v668_v2, %v222_v13  ;;  %v243_v23 = vadd.f32 %v668_v2, %v223_v14  ;;  %v266_v27 = vmax.f32 %v250_v17, 0.0  ;;  %v267_v28 = vmax.f32 %v251_v18, 0.0  ;;  %v208_v51 = vld [vmem:[%s663_s9 + $0x30] sm:$0xff]  ;;  %v209_v52 = vld [vmem:[%s663_s9 + $0x38] sm:$0xff]  ;;  %p531_p13 = pneg %p530_p12 }
  0x1c   : > { %v270_v29 = vmax.f32 %v254_v19, 0.0  ;;  %v246_v30 = vadd.f32 %v668_v2, %v226_v20  ;;  %v271_v32 = vmax.f32 %v255_v21, 0.0  ;;  %v247_v35 = vadd.f32 %v668_v2, %v227_v24 }
  0x1d   : > { %v258_v33 = vmax.f32 %v242_v22, 0.0  ;;  %v259_v34 = vmax.f32 %v243_v23, 0.0  ;;  %v278_v38 = vadd.f32 %v267_v28, %v266_v27  ;;  %v236_v46 = vmul.f32 %v658_v1, %v216_v31  ;;  %p536_p3 = pnand %p535_p2, %p531_p13 }
  0x1e   : > { %v262_v39 = vmax.f32 %v246_v30, 0.0  ;;  %v280_v43 = vadd.f32 %v271_v32, %v270_v29  ;;  %v263_v45 = vmax.f32 %v247_v35, 0.0  ;;  %v252_v47 = vadd.f32 %v668_v2, %v232_v40 }
  0x1f   : > { %v274_v44 = vadd.f32 %v259_v34, %v258_v33  ;;  %455 = vmatmul.msk.f32.vlgmr.msra.gmra.mxu2 %vm283_vm0, %v278_v38  ;;  %v253_v48 = vadd.f32 %v668_v2, %v233_v41  ;;  %v237_v49 = vmul.f32 %v658_v1, %v217_v36  ;;  %v224_v50 = vmul.f32 %v658_v1, %v204_v37 }
  0x20   : > { %457 = vmatmul.msk.f32.vlgmr.msra.gmra.mxu3 %vm283_vm0, %v280_v43  ;;  %v276_v53 = vadd.f32 %v263_v45, %v262_v39  ;;  %v256_v54 = vadd.f32 %v668_v2, %v236_v46  ;;  %v225_v55 = vmul.f32 %v658_v1, %v205_v42  ;;  %v268_v56 = vmax.f32 %v252_v47, 0.0 }
  0x21   : > { %451 = vmatmul.msk.f32.vlgmr.msra.gmra.mxu0 %vm283_vm0, %v274_v44  ;;  %v269_v57 = vmax.f32 %v253_v48, 0.0  ;;  %v257_v58 = vadd.f32 %v668_v2, %v237_v49  ;;  %v244_v59 = vadd.f32 %v668_v2, %v224_v50  ;;  %v228_v62 = vmul.f32 %v658_v1, %v208_v51 }
  0x22   : > { %453 = vmatmul.msk.f32.vlgmr.msra.gmra.mxu1 %vm283_vm0, %v276_v53  ;;  %v272_v60 = vmax.f32 %v256_v54, 0.0  ;;  %v245_v61 = vadd.f32 %v668_v2, %v225_v55  ;;  %v229_v63 = vmul.f32 %v658_v1, %v209_v52 }
  0x23   : > { %v279_v0 = vadd.f32 %v269_v57, %v268_v56  ;;  %v273_v3 = vmax.f32 %v257_v58, 0.0  ;;  %v260_v4 = vmax.f32 %v244_v59, 0.0  ;;  %v248_v6 = vadd.f32 %v668_v2, %v228_v62 }
  0x24   : > { %v261_v5 = vmax.f32 %v245_v61, 0.0  ;;  %v249_v7 = vadd.f32 %v668_v2, %v229_v63 }
  0x25   : > { %v281_v8 = vadd.f32 %v273_v3, %v272_v60  ;;  %v264_v10 = vmax.f32 %v248_v6, 0.0 }
  0x26   : > { %v275_v9 = vadd.f32 %v261_v5, %v260_v4  ;;  %v265_v11 = vmax.f32 %v249_v7, 0.0 }
  0x27   : > { %456 = vmatmul.msk.f32.gmra.mxu2 %vm283_vm0, %v279_v0 }
  0x28   : > { %458 = vmatmul.msk.f32.gmra.mxu3 %vm283_vm0, %v281_v8  ;;  %v277_v1 = vadd.f32 %v265_v11, %v264_v10 }
  0x29   : > { %452 = vmatmul.msk.f32.gmra.mxu0 %vm283_vm0, %v275_v9 }
  0x2a   : > { %454 = vmatmul.msk.f32.gmra.mxu1 %vm283_vm0, %v277_v1 }
  0x9e   : > { %v325_v12 = vpop.f32.mrf.mxu0 }
  0x9f   : > { %v349_v13 = vmul.f32 0.25, %v325_v12  ;;  %v331_v2 = vpop.f32.mrf.mxu1 }
  0xa0   : > { %v351_v14 = vmul.f32 0.25, %v331_v2 }
  0xa1   : > { %357 = vst [vmem:[%s193_s14] sm:$0xff] %v349_v13 }
  0xa2   : > { %359 = vst [vmem:[%s193_s14 + $0x10] sm:$0xff] %v351_v14  ;;  %v337_v15 = vpop.f32.mrf.mxu2 }
  0xa3   : > { %v353_v16 = vmul.f32 0.25, %v337_v15  ;;  %v343_v17 = vpop.f32.mrf.mxu3 }
  0xa4   : > { %v355_v18 = vmul.f32 0.25, %v343_v17 }
  0xa5   : > { %361 = vst [vmem:[%s193_s14 + $0x20] sm:$0xff] %v353_v16 }
  0xa6   : > { %v328_v19 = vpop.f32.mrf.mxu0  ;;  %363 = vst [vmem:[%s193_s14 + $0x30] sm:$0xff] %v355_v18 }
  0xa7   : > { %v350_v20 = vmul.f32 0.25, %v328_v19  ;;  %v334_v21 = vpop.f32.mrf.mxu1 }
  0xa8   : > { %v352_v22 = vmul.f32 0.25, %v334_v21 }
  0xa9   : > { %358 = vst [vmem:[%s193_s14 + $0x8] sm:$0xff] %v350_v20 }
  0xaa   : > { %360 = vst [vmem:[%s193_s14 + $0x18] sm:$0xff] %v352_v22  ;;  %v340_v23 = vpop.f32.mrf.mxu2 }
  0xab   : > { %v354_v24 = vmul.f32 0.25, %v340_v23  ;;  %v346_v25 = vpop.f32.mrf.mxu3 }
  0xac   : > { %v356_v26 = vmul.f32 0.25, %v346_v25 }
  0xad   : > { %362 = vst [vmem:[%s193_s14 + $0x28] sm:$0xff] %v354_v24 }
  0xae   : > { %364 = vst [vmem:[%s193_s14 + $0x38] sm:$0xff] %v356_v26 }
  0xaf   : > { %539 = shalt.err (!%p536_p3)
}
  0xb0   : > { %s576_s11 = smov 128   ;;  %s577_s12 = smov 8  }
  0xb1   : > { %469 = dma.vmem_to_hbm [thread:$0]  (%p641_p5), %s379_s28, 1024, %s381_s29, %s366_s19, %s576_s11, %s576_s11, %s577_s12  }
  0xb2 PF: > { %p475_p4 = scmp.ge.s32.totalorder %s574_s18, 2  ;;  %s395_s13 = sand.u32 1, %s562_s15  }
  0xb3   : > { %s396_s14 = scalar_lea.sflag [#allocation3], %s395_s13 }
  0xb4   : > { %p472_p7 = pnand %p475_p4, %p645_p6 }
  0xb6   : > { %p473_p8 = pneg %p472_p7 }
  0xb8   : > { %557 = dma.done.wait (%p473_p8), %s396_s14, 1024  }
  0xb9   : > { %559 = vsyncadd (%p473_p8), %s396_s14, 4294966272  ;;  %p14_p9 = scmp.ge.s32.totalorder %s628_s21, 4   ;;  %s769_s15 = smov %s566_s16 }
  0xba   : > { %s770_s16 = smov %s570_s17  ;;  %s771_s17 = smov %s639_s24 }
  0xbb   : > { %s772_s18 = smov %s628_s21  ;;  %16 = sbr.rel (!%p14_p9) target bundleno = 3 (0x3), region = 71 }
  0xc0   :  { %402 = vsyncpa [#allocation3], 1 }
  0xc1   :  { %404 = vsyncpa [#allocation3 + $0x1], 1 }

</bundles_post_ra>
